<compile_context>
chip_gen: v6e
topology: v6e:2x2x1
jax: 0.10.0
libtpu: 0.0.40
codegen_flags: <defaults>
</compile_context>

<pallas_src>
import jax
import jax.numpy as jnp
from jax.experimental import pallas as pl
from jax.experimental.pallas import tpu as pltpu

N_ACTIONS = 21 ** 2  # 441
LANE = 128


def _round_up(x, m):
    return ((x + m - 1) // m) * m


def dqn_kernel(x_ref,
               w1_ref, b1_ref,
               w2_ref, b2_ref,
               w3_ref, b3_ref,
               w4_ref, b4_ref,
               w5_ref, b5_ref,
               out_ref):
    # All matmuls: bf16 operands, f32 accumulation on the MXU.
    h = x_ref[...].astype(jnp.bfloat16)

    # layer1 + relu
    h = jnp.dot(h, w1_ref[...], preferred_element_type=jnp.float32) + b1_ref[...]
    h = jnp.maximum(h, 0.0).astype(jnp.bfloat16)

    # layer2 + relu
    h = jnp.dot(h, w2_ref[...], preferred_element_type=jnp.float32) + b2_ref[...]
    h = jnp.maximum(h, 0.0).astype(jnp.bfloat16)

    # dropout(p=0.2) -- eval mode => identity
    # TODO(synk): train-mode dropout mask not implemented.

    # layer3 + relu
    h = jnp.dot(h, w3_ref[...], preferred_element_type=jnp.float32) + b3_ref[...]
    h = jnp.maximum(h, 0.0).astype(jnp.bfloat16)

    # layer4 + relu
    h = jnp.dot(h, w4_ref[...], preferred_element_type=jnp.float32) + b4_ref[...]
    h = jnp.maximum(h, 0.0).astype(jnp.bfloat16)

    # layer5 (no activation); output padded to a lane-dense width (512)
    out_ref[...] = (jnp.dot(h, w5_ref[...], preferred_element_type=jnp.float32)
                    + b5_ref[...])


def init_params(key, n_observations, n_actions):
    """PyTorch-Linear-style init: U(-1/sqrt(fan_in), 1/sqrt(fan_in))."""
    dims = [n_observations, 128, 256, 512, 256, n_actions]
    params = []
    for d_in, d_out in zip(dims[:-1], dims[1:]):
        key, kw, kb = jax.random.split(key, 3)
        bound = 1.0 / (d_in ** 0.5)
        w = jax.random.uniform(kw, (d_in, d_out), jnp.float32, -bound, bound)
        b = jax.random.uniform(kb, (1, d_out), jnp.float32, -bound, bound)
        params.append((w, b))
    return params


def prepare_params(params):
    """Cast weights to bf16 (f32 accumulate happens on the MXU), keep biases in
    f32, and zero-pad the final layer's output dim to a multiple of 128 so the
    output store is unmasked and the last matmul has clean N tiles."""
    prepped = []
    last = len(params) - 1
    for i, (w, b) in enumerate(params):
        if i == last:
            n_out = w.shape[1]
            n_pad = _round_up(n_out, LANE)
            w = jnp.pad(w, ((0, 0), (0, n_pad - n_out)))
            b = jnp.pad(b, ((0, 0), (0, n_pad - n_out)))
        prepped.append((w.astype(jnp.bfloat16), b.astype(jnp.float32)))
    return prepped


def dqn_forward(x, prepared_params, *, n_actions=N_ACTIONS, batch_tile=None):
    B, n_obs = x.shape
    (w1, b1), (w2, b2), (w3, b3), (w4, b4), (w5, b5) = prepared_params
    n_out_pad = w5.shape[1]

    # Batch tiling: single grid step for B <= 256, else 256-row tiles.
    if batch_tile is None:
        batch_tile = min(256, _round_up(B, 8))
    pad_B = _round_up(B, batch_tile)
    if pad_B != B:
        x = jnp.pad(x, ((0, pad_B - B), (0, 0)))
    grid = (pad_B // batch_tile,)

    def resident_spec(shape):
        # Whole-array block, same block index every grid step (stays in VMEM).
        return pl.BlockSpec(shape, lambda i: (0,) * len(shape))

    in_specs = [
        pl.BlockSpec((batch_tile, n_obs), lambda i: (i, 0)),   # x tile
        resident_spec(w1.shape), resident_spec(b1.shape),
        resident_spec(w2.shape), resident_spec(b2.shape),
        resident_spec(w3.shape), resident_spec(b3.shape),
        resident_spec(w4.shape), resident_spec(b4.shape),
        resident_spec(w5.shape), resident_spec(b5.shape),
    ]
    out_spec = pl.BlockSpec((batch_tile, n_out_pad), lambda i: (i, 0))

    # Advisory cost estimate so XLA schedules surrounding ops sensibly.
    flops = 2 * pad_B * (n_obs * 128 + 128 * 256 + 256 * 512
                         + 512 * 256 + 256 * n_out_pad)
    weight_bytes = sum(w.size * w.dtype.itemsize + b.size * b.dtype.itemsize
                       for (w, b) in prepared_params)
    bytes_accessed = (x.size * x.dtype.itemsize
                      + pad_B * n_out_pad * 4
                      + weight_bytes)

    out = pl.pallas_call(
        dqn_kernel,
        out_shape=jax.ShapeDtypeStruct((pad_B, n_out_pad), jnp.float32),
        grid_spec=pltpu.PrefetchScalarGridSpec(
            num_scalar_prefetch=0,
            grid=grid,
            in_specs=in_specs,
            out_specs=out_spec,
        ),
        compiler_params=pltpu.CompilerParams(
            dimension_semantics=("parallel",),
            # Headroom if batch_tile is pushed past the v5e 16 MiB default.
            vmem_limit_bytes=32 * 1024 * 1024,
        ),
        cost_estimate=pl.CostEstimate(
            flops=flops, transcendentals=0, bytes_accessed=bytes_accessed),
    )(x, w1, b1, w2, b2, w3, b3, w4, b4, w5, b5)

    return out[:B, :n_actions]


def dqn_reference(x, prepared_params, *, n_actions=N_ACTIONS):
    """Pure-JAX reference doing the same bf16-in / f32-accumulate math."""
    (w1, b1), (w2, b2), (w3, b3), (w4, b4), (w5, b5) = prepared_params

    def layer(h, w, b, relu=True):
        h = jnp.dot(h.astype(jnp.bfloat16), w,
                    preferred_element_type=jnp.float32) + b
        return jnp.maximum(h, 0.0) if relu else h

    h = layer(x, w1, b1)
    h = layer(h, w2, b2)
    h = layer(h, w3, b3)
    h = layer(h, w4, b4)
    h = layer(h, w5, b5, relu=False)
    return h[:, :n_actions]


if __name__ == "__main__":
    key = jax.random.PRNGKey(0)
    n_observations = 32
    batch = 16

    kx, kp = jax.random.split(key)
    x = jax.random.normal(kx, (batch, n_observations), dtype=jnp.float32)
    params = init_params(kp, n_observations, N_ACTIONS)
    prepped = prepare_params(params)

    out = dqn_forward(x, prepped, n_actions=N_ACTIONS)
    out = jax.block_until_ready(out)

    ref = dqn_reference(x, prepped, n_actions=N_ACTIONS)
    assert out.shape == (batch, N_ACTIONS), out.shape
    max_err = float(jnp.max(jnp.abs(out - ref)))
    assert jnp.allclose(out, ref, atol=1e-2, rtol=1e-2), max_err

    print("KERNEL_OK")
</pallas_src>

<mosaic_0001>
module attributes {stable_mosaic.version = 11 : i64} {
  func.func @dqn_kernel(%arg0: i32, %arg1: memref<16x32xf32, #tpu.memory_space<vmem>>, %arg2: memref<32x128xbf16, #tpu.memory_space<vmem>>, %arg3: memref<1x128xf32, #tpu.memory_space<vmem>>, %arg4: memref<128x256xbf16, #tpu.memory_space<vmem>>, %arg5: memref<1x256xf32, #tpu.memory_space<vmem>>, %arg6: memref<256x512xbf16, #tpu.memory_space<vmem>>, %arg7: memref<1x512xf32, #tpu.memory_space<vmem>>, %arg8: memref<512x256xbf16, #tpu.memory_space<vmem>>, %arg9: memref<1x256xf32, #tpu.memory_space<vmem>>, %arg10: memref<256x512xbf16, #tpu.memory_space<vmem>>, %arg11: memref<1x512xf32, #tpu.memory_space<vmem>>, %arg12: memref<16x512xf32, #tpu.memory_space<vmem>>) attributes {dimension_semantics = [#tpu.dimension_semantics<parallel>], iteration_bounds = array<i64: 1>, scalar_prefetch = 0 : i64, scratch_operands = 0 : i64, tpu.core_type = #tpu.core_type<tc>, window_params = [{transform_indices = @transform_0, window_bounds = array<i64: 16, 32>}, {pipeline_mode = #tpu.pipeline_mode<synchronous>, transform_indices = @transform_1, window_bounds = array<i64: 32, 128>}, {pipeline_mode = #tpu.pipeline_mode<synchronous>, transform_indices = @transform_2, window_bounds = array<i64: 1, 128>}, {pipeline_mode = #tpu.pipeline_mode<synchronous>, transform_indices = @transform_3, window_bounds = array<i64: 128, 256>}, {pipeline_mode = #tpu.pipeline_mode<synchronous>, transform_indices = @transform_4, window_bounds = array<i64: 1, 256>}, {pipeline_mode = #tpu.pipeline_mode<synchronous>, transform_indices = @transform_5, window_bounds = array<i64: 256, 512>}, {pipeline_mode = #tpu.pipeline_mode<synchronous>, transform_indices = @transform_6, window_bounds = array<i64: 1, 512>}, {pipeline_mode = #tpu.pipeline_mode<synchronous>, transform_indices = @transform_7, window_bounds = array<i64: 512, 256>}, {pipeline_mode = #tpu.pipeline_mode<synchronous>, transform_indices = @transform_8, window_bounds = array<i64: 1, 256>}, {pipeline_mode = #tpu.pipeline_mode<synchronous>, transform_indices = @transform_9, window_bounds = array<i64: 256, 512>}, {pipeline_mode = #tpu.pipeline_mode<synchronous>, transform_indices = @transform_10, window_bounds = array<i64: 1, 512>}, {transform_indices = @transform_11, window_bounds = array<i64: 16, 512>}]} {
    %c0 = arith.constant 0 : index
    %c0_0 = arith.constant 0 : index
    %0 = vector.load %arg1[%c0, %c0_0] : memref<16x32xf32, #tpu.memory_space<vmem>>, vector<16x32xf32>
    %1 = arith.truncf %0 : vector<16x32xf32> to vector<16x32xbf16>
    %c0_1 = arith.constant 0 : index
    %c0_2 = arith.constant 0 : index
    %2 = vector.load %arg2[%c0_1, %c0_2] : memref<32x128xbf16, #tpu.memory_space<vmem>>, vector<32x128xbf16>
    %cst = arith.constant dense<0.000000e+00> : vector<16x128xf32>
    %3 = tpu.matmul %1, %2, %cst {dimension_numbers = #tpu.dot_dimension_numbers<[1], [0], [0], [1], [0, 0, 1, 1], [], []>} : vector<16x32xbf16>, vector<32x128xbf16>, vector<16x128xf32> -> vector<16x128xf32>
    %c0_3 = arith.constant 0 : index
    %c0_4 = arith.constant 0 : index
    %4 = vector.load %arg3[%c0_3, %c0_4] : memref<1x128xf32, #tpu.memory_space<vmem>>, vector<1x128xf32>
    %5 = vector.broadcast %4 : vector<1x128xf32> to vector<16x128xf32>
    %6 = arith.addf %3, %5 : vector<16x128xf32>
    %cst_5 = arith.constant 0.000000e+00 : f32
    %7 = vector.broadcast %cst_5 : f32 to vector<16x128xf32>
    %8 = arith.maximumf %6, %7 : vector<16x128xf32>
    %9 = arith.truncf %8 : vector<16x128xf32> to vector<16x128xbf16>
    %c0_6 = arith.constant 0 : index
    %c0_7 = arith.constant 0 : index
    %10 = vector.load %arg4[%c0_6, %c0_7] : memref<128x256xbf16, #tpu.memory_space<vmem>>, vector<128x256xbf16>
    %cst_8 = arith.constant dense<0.000000e+00> : vector<16x256xf32>
    %11 = tpu.matmul %9, %10, %cst_8 {dimension_numbers = #tpu.dot_dimension_numbers<[1], [0], [0], [1], [0, 0, 1, 1], [], []>} : vector<16x128xbf16>, vector<128x256xbf16>, vector<16x256xf32> -> vector<16x256xf32>
    %c0_9 = arith.constant 0 : index
    %c0_10 = arith.constant 0 : index
    %12 = vector.load %arg5[%c0_9, %c0_10] : memref<1x256xf32, #tpu.memory_space<vmem>>, vector<1x256xf32>
    %13 = vector.broadcast %12 : vector<1x256xf32> to vector<16x256xf32>
    %14 = arith.addf %11, %13 : vector<16x256xf32>
    %cst_11 = arith.constant 0.000000e+00 : f32
    %15 = vector.broadcast %cst_11 : f32 to vector<16x256xf32>
    %16 = arith.maximumf %14, %15 : vector<16x256xf32>
    %17 = arith.truncf %16 : vector<16x256xf32> to vector<16x256xbf16>
    %c0_12 = arith.constant 0 : index
    %c0_13 = arith.constant 0 : index
    %18 = vector.load %arg6[%c0_12, %c0_13] : memref<256x512xbf16, #tpu.memory_space<vmem>>, vector<256x512xbf16>
    %cst_14 = arith.constant dense<0.000000e+00> : vector<16x512xf32>
    %19 = tpu.matmul %17, %18, %cst_14 {dimension_numbers = #tpu.dot_dimension_numbers<[1], [0], [0], [1], [0, 0, 1, 1], [], []>} : vector<16x256xbf16>, vector<256x512xbf16>, vector<16x512xf32> -> vector<16x512xf32>
    %c0_15 = arith.constant 0 : index
    %c0_16 = arith.constant 0 : index
    %20 = vector.load %arg7[%c0_15, %c0_16] : memref<1x512xf32, #tpu.memory_space<vmem>>, vector<1x512xf32>
    %21 = vector.broadcast %20 : vector<1x512xf32> to vector<16x512xf32>
    %22 = arith.addf %19, %21 : vector<16x512xf32>
    %cst_17 = arith.constant 0.000000e+00 : f32
    %23 = vector.broadcast %cst_17 : f32 to vector<16x512xf32>
    %24 = arith.maximumf %22, %23 : vector<16x512xf32>
    %25 = arith.truncf %24 : vector<16x512xf32> to vector<16x512xbf16>
    %c0_18 = arith.constant 0 : index
    %c0_19 = arith.constant 0 : index
    %26 = vector.load %arg8[%c0_18, %c0_19] : memref<512x256xbf16, #tpu.memory_space<vmem>>, vector<512x256xbf16>
    %cst_20 = arith.constant dense<0.000000e+00> : vector<16x256xf32>
    %27 = tpu.matmul %25, %26, %cst_20 {dimension_numbers = #tpu.dot_dimension_numbers<[1], [0], [0], [1], [0, 0, 1, 1], [], []>} : vector<16x512xbf16>, vector<512x256xbf16>, vector<16x256xf32> -> vector<16x256xf32>
    %c0_21 = arith.constant 0 : index
    %c0_22 = arith.constant 0 : index
    %28 = vector.load %arg9[%c0_21, %c0_22] : memref<1x256xf32, #tpu.memory_space<vmem>>, vector<1x256xf32>
    %29 = vector.broadcast %28 : vector<1x256xf32> to vector<16x256xf32>
    %30 = arith.addf %27, %29 : vector<16x256xf32>
    %cst_23 = arith.constant 0.000000e+00 : f32
    %31 = vector.broadcast %cst_23 : f32 to vector<16x256xf32>
    %32 = arith.maximumf %30, %31 : vector<16x256xf32>
    %33 = arith.truncf %32 : vector<16x256xf32> to vector<16x256xbf16>
    %c0_24 = arith.constant 0 : index
    %c0_25 = arith.constant 0 : index
    %34 = vector.load %arg10[%c0_24, %c0_25] : memref<256x512xbf16, #tpu.memory_space<vmem>>, vector<256x512xbf16>
    %cst_26 = arith.constant dense<0.000000e+00> : vector<16x512xf32>
    %35 = tpu.matmul %33, %34, %cst_26 {dimension_numbers = #tpu.dot_dimension_numbers<[1], [0], [0], [1], [0, 0, 1, 1], [], []>} : vector<16x256xbf16>, vector<256x512xbf16>, vector<16x512xf32> -> vector<16x512xf32>
    %c0_27 = arith.constant 0 : index
    %c0_28 = arith.constant 0 : index
    %36 = vector.load %arg11[%c0_27, %c0_28] : memref<1x512xf32, #tpu.memory_space<vmem>>, vector<1x512xf32>
    %37 = vector.broadcast %36 : vector<1x512xf32> to vector<16x512xf32>
    %38 = arith.addf %35, %37 : vector<16x512xf32>
    %c0_29 = arith.constant 0 : index
    %c0_30 = arith.constant 0 : index
    %39 = vector.load %arg12[%c0_29, %c0_30] : memref<16x512xf32, #tpu.memory_space<vmem>>, vector<16x512xf32>
    tpu.vector_store %arg12[%c0_29, %c0_30], %38 {strides = array<i32>} : memref<16x512xf32, #tpu.memory_space<vmem>>, vector<16x512xf32>,
    return
  }
  func.func @transform_0(%arg0: i32) -> (i32, i32) {
    %c0_i32 = arith.constant 0 : i32
    %c0_i32_0 = arith.constant 0 : i32
    return %arg0, %c0_i32 : i32, i32
  }
  func.func @transform_1(%arg0: i32) -> (i32, i32) {
    %c0_i32 = arith.constant 0 : i32
    %c0_i32_0 = arith.constant 0 : i32
    %c0_i32_1 = arith.constant 0 : i32
    return %c0_i32, %c0_i32_0 : i32, i32
  }
  func.func @transform_2(%arg0: i32) -> (i32, i32) {
    %c0_i32 = arith.constant 0 : i32
    %c0_i32_0 = arith.constant 0 : i32
    %c0_i32_1 = arith.constant 0 : i32
    return %c0_i32, %c0_i32_0 : i32, i32
  }
  func.func @transform_3(%arg0: i32) -> (i32, i32) {
    %c0_i32 = arith.constant 0 : i32
    %c0_i32_0 = arith.constant 0 : i32
    %c0_i32_1 = arith.constant 0 : i32
    return %c0_i32, %c0_i32_0 : i32, i32
  }
  func.func @transform_4(%arg0: i32) -> (i32, i32) {
    %c0_i32 = arith.constant 0 : i32
    %c0_i32_0 = arith.constant 0 : i32
    %c0_i32_1 = arith.constant 0 : i32
    return %c0_i32, %c0_i32_0 : i32, i32
  }
  func.func @transform_5(%arg0: i32) -> (i32, i32) {
    %c0_i32 = arith.constant 0 : i32
    %c0_i32_0 = arith.constant 0 : i32
    %c0_i32_1 = arith.constant 0 : i32
    return %c0_i32, %c0_i32_0 : i32, i32
  }
  func.func @transform_6(%arg0: i32) -> (i32, i32) {
    %c0_i32 = arith.constant 0 : i32
    %c0_i32_0 = arith.constant 0 : i32
    %c0_i32_1 = arith.constant 0 : i32
    return %c0_i32, %c0_i32_0 : i32, i32
  }
  func.func @transform_7(%arg0: i32) -> (i32, i32) {
    %c0_i32 = arith.constant 0 : i32
    %c0_i32_0 = arith.constant 0 : i32
    %c0_i32_1 = arith.constant 0 : i32
    return %c0_i32, %c0_i32_0 : i32, i32
  }
  func.func @transform_8(%arg0: i32) -> (i32, i32) {
    %c0_i32 = arith.constant 0 : i32
    %c0_i32_0 = arith.constant 0 : i32
    %c0_i32_1 = arith.constant 0 : i32
    return %c0_i32, %c0_i32_0 : i32, i32
  }
  func.func @transform_9(%arg0: i32) -> (i32, i32) {
    %c0_i32 = arith.constant 0 : i32
    %c0_i32_0 = arith.constant 0 : i32
    %c0_i32_1 = arith.constant 0 : i32
    return %c0_i32, %c0_i32_0 : i32, i32
  }
  func.func @transform_10(%arg0: i32) -> (i32, i32) {
    %c0_i32 = arith.constant 0 : i32
    %c0_i32_0 = arith.constant 0 : i32
    %c0_i32_1 = arith.constant 0 : i32
    return %c0_i32, %c0_i32_0 : i32, i32
  }
  func.func @transform_11(%arg0: i32) -> (i32, i32) {
    %c0_i32 = arith.constant 0 : i32
    %c0_i32_0 = arith.constant 0 : i32
    return %arg0, %c0_i32 : i32, i32
  }
}

</mosaic_0001>

<bundles_post_ra>
// kernel: tpu_custom_call.1
= control target key start
LH: loop header
LB: loop body
LE: loop exit
PB: predicated region body
PF: predicated region fallthrough
CT: control target
= control target key end

     0   :  { %16 = vsyncpa [#allocation3], 0  ;;  %s2795_s0 = inlined_call_operand.hbm [shape: f32[16,32], index: 0, kind: input, shape index: {}]   ;;  %s2796_s1 = inlined_call_operand.hbm [shape: bf16[32,128], index: 1, kind: input, shape index: {}]   ;;  %s2797_s2 = inlined_call_operand.hbm [shape: f32[1,128], index: 2, kind: input, shape index: {}]   ;;  %s2798_s3 = inlined_call_operand.hbm [shape: bf16[128,256], index: 3, kind: input, shape index: {}]   ;;  %s2799_s4 = inlined_call_operand.hbm [shape: f32[1,256], index: 4, kind: input, shape index: {}]   ;;  %s2800_s5 = inlined_call_operand.hbm [shape: bf16[256,512], index: 5, kind: input, shape index: {}]   ;;  %s2801_s6 = inlined_call_operand.vmem [shape: f32[1,512], index: 6, kind: input, shape index: {}]   ;;  %s2802_s7 = inlined_call_operand.hbm [shape: bf16[512,256], index: 7, kind: input, shape index: {}]   ;;  %s2803_s8 = inlined_call_operand.vmem [shape: f32[1,256], index: 8, kind: input, shape index: {}]   ;;  %s2804_s9 = inlined_call_operand.hbm [shape: bf16[256,512], index: 9, kind: input, shape index: {}]   ;;  %s2805_s10 = inlined_call_operand.vmem [shape: f32[1,512], index: 10, kind: input, shape index: {}]   ;;  %s2806_s11 = inlined_call_operand.hbm [shape: f32[16,512], index: 11, kind: output, shape index: {}]  }
   0x1   :  { %17 = vsyncpa [#allocation6], 0 }
   0x2   :  { %18 = vsyncpa [#allocation9], 0 }
   0x3   :  { %19 = vsyncpa [#allocation12], 0 }
   0x4   :  { %20 = vsyncpa [#allocation15], 0 }
   0x5   :  { %21 = vsyncpa [#allocation4], 0  ;;  %s2638_s17 = smov [#allocation5]  }
   0x6   :  { %s39_s18 = sshll.u32 %s2638_s17, 4  ;;  %s40_s18 = int_to_ptr.vmem [resolvable:$true] %s39_s18 }
   0x7   :  { %s2454_s19 = scalar_lea.vmem %s40_s18, 256  ;;  %p2459_p1 = scmp.lt.s32.totalorder %s40_s18, %s40_s18 }
   0x8   :  { %p2455_p0 = scmp.ne.s32.totalorder %s40_s18, %s2454_s19  ;;  %p2460_p2 = scmp.lt.s32.totalorder %s2454_s19, %s2454_s19 }
   0xa   :  { %p2461_p3 = por %p2460_p2, %p2459_p1 }
   0xc   :  { %p2462_p4 = pnand %p2461_p3, %p2455_p0 }
   0xe   :  { %2465 = shalt.err (!%p2462_p4)
}
   0xf   :  { %s2639_s20 = smov 64   ;;  %s2640_s21 = smov 4  }
  0x10   :  { %45 = dma.hbm_to_vmem [thread:$0]  %s2796_s1, 256, %s40_s18, [#allocation6], %s2639_s20, %s2639_s20, %s2640_s21  }
  0x11   :  { %s2641_s24 = smov [#allocation8]   ;;  %s2642_s26 = smov [#allocation11]  }
  0x12   :  { %s61_s25 = sshll.u32 %s2641_s24, 4  ;;  %s83_s27 = sshll.u32 %s2642_s26, 4  ;;  %s62_s25 = int_to_ptr.vmem [resolvable:$true] %s61_s25  ;;  %s84_s27 = int_to_ptr.vmem [resolvable:$true] %s83_s27 }
  0x13   :  { %s2474_s28 = scalar_lea.vmem %s62_s25, 2048  ;;  %p2479_p6 = scmp.lt.s32.totalorder %s62_s25, %s62_s25 }
  0x14   :  { %p2475_p5 = scmp.ne.s32.totalorder %s62_s25, %s2474_s28  ;;  %p2480_p7 = scmp.lt.s32.totalorder %s2474_s28, %s2474_s28 }
  0x16   :  { %p2481_p8 = por %p2480_p7, %p2479_p6 }
  0x18   :  { %p2482_p9 = pnand %p2481_p8, %p2475_p5 }
  0x1a   :  { %2485 = shalt.err (!%p2482_p9)
}
  0x1b   :  { %s2643_s29 = smov 128   ;;  %s2644_s30 = smov 8  }
  0x1c   :  { %67 = dma.hbm_to_vmem [thread:$0]  %s2798_s3, 2048, %s62_s25, [#allocation9], %s2643_s29, %s2643_s29, %s2644_s30  }
  0x1d   :  { %s2494_s1 = scalar_lea.vmem %s84_s27, 8192  ;;  %p2499_p11 = scmp.lt.s32.totalorder %s84_s27, %s84_s27 }
  0x1e   :  { %p2495_p10 = scmp.ne.s32.totalorder %s84_s27, %s2494_s1  ;;  %p2500_p12 = scmp.lt.s32.totalorder %s2494_s1, %s2494_s1 }
  0x20   :  { %p2501_p13 = por %p2500_p12, %p2499_p11 }
  0x22   :  { %p2502_p0 = pnand %p2501_p13, %p2495_p10 }
  0x24   :  { %2505 = shalt.err (!%p2502_p0)
}
  0x25   :  { %s2645_s14 = smov 256   ;;  %s2646_s15 = smov 16  }
  0x26   :  { %89 = dma.hbm_to_vmem [thread:$0]  %s2800_s5, 8192, %s84_s27, [#allocation12], %s2645_s14, %s2645_s14, %s2646_s15  }
  0x27   :  { %s2647_s18 = smov [#allocation2]   ;;  %s2648_s3 = smov [#allocation7]  }
  0x28   :  { %s27_s19 = sshll.u32 %s2647_s18, 4  ;;  %s52_s20 = sshll.u32 %s2648_s3, 4  ;;  %s28_s19 = int_to_ptr.vmem [resolvable:$true] %s27_s19  ;;  %s53_s20 = int_to_ptr.vmem [resolvable:$true] %s52_s20 }
  0x29   :  { %s2514_s21 = scalar_lea.vmem %s28_s19, 256  ;;  %p2519_p2 = scmp.lt.s32.totalorder %s28_s19, %s28_s19 }
  0x2a   :  { %p2515_p1 = scmp.ne.s32.totalorder %s28_s19, %s2514_s21  ;;  %p2520_p3 = scmp.lt.s32.totalorder %s2514_s21, %s2514_s21 }
  0x2c   :  { %p2521_p4 = por %p2520_p3, %p2519_p2 }
  0x2e   :  { %p2522_p5 = pnand %p2521_p4, %p2515_p1 }
  0x30   :  { %2525 = shalt.err (!%p2522_p5)
}
  0x31   :  { %33 = dma.hbm_to_vmem [thread:$0]  %s2795_s0, 256, %s28_s19, [#allocation3], %s2643_s29, %s2643_s29, %s2644_s30  }
  0x32   :  { %s2534_s5 = scalar_lea.vmem %s53_s20, 16  ;;  %s2538_s24 = scalar_lea.vmem %s53_s20, 32 }
  0x33   :  { %p2535_p6 = scmp.ne.s32.totalorder %s53_s20, %s2534_s5  ;;  %p2539_p7 = scmp.lt.s32.totalorder %s53_s20, %s53_s20 }
  0x34   :  { %p2540_p8 = scmp.lt.s32.totalorder %s2538_s24, %s2534_s5 }
  0x36   :  { %p2541_p9 = por %p2540_p8, %p2539_p7 }
  0x38   :  { %p2542_p10 = pnand %p2541_p9, %p2535_p6 }
  0x3a   :  { %2545 = shalt.err (!%p2542_p10)
}
  0x3b   :  { %55 = dma.hbm_to_vmem [thread:$0]  %s2797_s2, 16, %s53_s20, [#allocation6]  }
  0x3c   :  { %s2649_s27 = smov [#allocation10]   ;;  %s2650_s12 = smov [#allocation13]  }
  0x3d   :  { %s74_s28 = sshll.u32 %s2649_s27, 4  ;;  %s97_s13 = sshll.u32 %s2650_s12, 4  ;;  %s75_s28 = int_to_ptr.vmem [resolvable:$true] %s74_s28  ;;  %s98_s13 = int_to_ptr.vmem [resolvable:$true] %s97_s13 }
  0x3e   :  { %s2554_s1 = scalar_lea.vmem %s75_s28, 32  ;;  %p2559_p12 = scmp.lt.s32.totalorder %s75_s28, %s75_s28 }
  0x3f   :  { %p2555_p11 = scmp.ne.s32.totalorder %s75_s28, %s2554_s1  ;;  %p2560_p13 = scmp.lt.s32.totalorder %s2554_s1, %s2554_s1 }
  0x41   :  { %p2561_p0 = por %p2560_p13, %p2559_p12 }
  0x43   :  { %p2562_p1 = pnand %p2561_p0, %p2555_p11 }
  0x45   :  { %2565 = shalt.err (!%p2562_p1)
}
  0x46   :  { %77 = dma.hbm_to_vmem [thread:$0]  %s2799_s4, 32, %s75_s28, [#allocation9]  }
  0x47   :  { %s2574_s17 = scalar_lea.vmem %s98_s13, 8192  ;;  %p2579_p3 = scmp.lt.s32.totalorder %s98_s13, %s98_s13 }
  0x48   :  { %p2575_p2 = scmp.ne.s32.totalorder %s98_s13, %s2574_s17  ;;  %p2580_p4 = scmp.lt.s32.totalorder %s2574_s17, %s2574_s17 }
  0x4a   :  { %p2581_p5 = por %p2580_p4, %p2579_p3 }
  0x4c   :  { %p2582_p6 = pnand %p2581_p5, %p2575_p2 }
  0x4e   :  { %2585 = shalt.err (!%p2582_p6)
}
  0x4f   :  { %103 = dma.hbm_to_vmem [thread:$0]  %s2802_s7, 8192, %s98_s13, [#allocation12], %s2643_s29, %s2643_s29, %s2644_s30  }
  0x50   :  { %s2651_s19 = smov [#allocation14]  }
  0x51   :  { %s111_s3 = sshll.u32 %s2651_s19, 4  ;;  %s112_s3 = int_to_ptr.vmem [resolvable:$true] %s111_s3 }
  0x52   :  { %s2594_s20 = scalar_lea.vmem %s112_s3, 8192  ;;  %p2599_p8 = scmp.lt.s32.totalorder %s112_s3, %s112_s3 }
  0x53   :  { %p2595_p7 = scmp.ne.s32.totalorder %s112_s3, %s2594_s20  ;;  %p2600_p9 = scmp.lt.s32.totalorder %s2594_s20, %s2594_s20 }
  0x55   :  { %p2601_p10 = por %p2600_p9, %p2599_p8 }
  0x57   :  { %p2602_p11 = pnand %p2601_p10, %p2595_p7 }
  0x59   :  { %2605 = shalt.err (!%p2602_p11)
}
  0x5a   :  { %117 = dma.hbm_to_vmem [thread:$0]  %s2804_s9, 8192, %s112_s3, [#allocation15], %s2645_s14, %s2645_s14, %s2646_s15  }
  0x5b   :  { %2626 = dma.done.wait [#allocation3], 256  }
  0x5c   :  { %2627 = vsyncadd [#allocation3], 4294967040 }
  0x5d   :  { %2628 = dma.done.wait [#allocation6], 272  }
  0x5e   :  { %2629 = vsyncadd [#allocation6], 4294967024 }
  0x5f   :  { %2630 = dma.done.wait [#allocation9], 2080  }
  0x60   :  { %2631 = vsyncadd [#allocation9], 4294965216 }
  0x61   :  { %2632 = dma.done.wait [#allocation12], 16384  }
  0x62   :  { %2633 = vsyncadd [#allocation12], 4294950912 }
  0x63   :  { %2634 = dma.done.wait [#allocation15], 8192  }
  0x64   :  { %2635 = vsyncadd [#allocation15], 4294959104  ;;  %v2652_v0 = vmov 0.0   ;;  %vm2653_vm0 = vmmov 0   ;;  %v2132_v1 = vld [vmem:[#allocation5 + $0x8] sm:$0xff]   ;;  %v2133_v2 = vld [vmem:[#allocation5] sm:$0xff]  }
  0x65   :  { %2104 = vmatprep.subr.bf16.mxu0 %v2652_v0  ;;  %2108 = vmatprep.mubr.msk.bf16.mxu0 %vm2653_vm0, %v2652_v0  ;;  %v145_v3 = vld [vmem:[#allocation2] sm:$0xff]  ;;  %v146_v4 = vld [vmem:[#allocation2 + $0x8] sm:$0xff]  ;;  %v2136_v6 = vld [vmem:[#allocation8 + $0x70] ss:$8 sps:$4 sm:$0xff]   ;;  %vm171_vm1 = vcmask 261120   ;;  %v2654_v22 = vmov 0  }
  0x66   :  { %2105 = vmatpush3.bf16.msra.mxu0 %v2132_v1  ;;  %v2134_v5 = vld [vmem:[#allocation8 + $0x74] ss:$8 sps:$4 sm:$0xff]   ;;  %v2137_v7 = vld [vmem:[#allocation8 + $0x64] ss:$8 sps:$4 sm:$0xff]   ;;  %v147_v8 = vpack.c.bf16 %v146_v4, %v145_v3  ;;  %v2139_v9 = vld [vmem:[#allocation8 + $0x60] ss:$8 sps:$4 sm:$0xff]   ;;  %359 = vmatprep.mubr.bf16.mxu1 %v2654_v22 }
  0x67   :  { %2106 = vmatprep.subr.bf16.mxu0 %v2652_v0  ;;  %327 = vmatprep.subr.bf16.mxu1 %v2134_v5  ;;  %v2140_v10 = vld [vmem:[#allocation8 + $0x54] ss:$8 sps:$4 sm:$0xff]   ;;  %v2142_v11 = vld [vmem:[#allocation8 + $0x50] ss:$8 sps:$4 sm:$0xff]   ;;  %v2143_v12 = vld [vmem:[#allocation8 + $0x44] ss:$8 sps:$4 sm:$0xff]  }
  0x68   :  { %328 = vmatpush1.bf16.msra.mxu1 %v2136_v6  ;;  %v2145_v13 = vld [vmem:[#allocation8 + $0x40] ss:$8 sps:$4 sm:$0xff]   ;;  %v2146_v14 = vld [vmem:[#allocation8 + $0x34] ss:$8 sps:$4 sm:$0xff]   ;;  %v2148_v15 = vld [vmem:[#allocation8 + $0x30] ss:$8 sps:$4 sm:$0xff]  }
  0x69   :  { %329 = vmatprep.subr.bf16.mxu1 %v2137_v7  ;;  %v2149_v16 = vld [vmem:[#allocation8 + $0x24] ss:$8 sps:$4 sm:$0xff]   ;;  %v2151_v17 = vld [vmem:[#allocation8 + $0x20] ss:$8 sps:$4 sm:$0xff]   ;;  %v2152_v18 = vld [vmem:[#allocation8 + $0x14] ss:$8 sps:$4 sm:$0xff]  }
  0x6a   :  { %2107 = vmatpush3.bf16.msra.mxu0 %v2133_v2  ;;  %v2154_v19 = vld [vmem:[#allocation8 + $0x10] ss:$8 sps:$4 sm:$0xff]   ;;  %v2155_v20 = vld [vmem:[#allocation8 + $0x4] ss:$8 sps:$4 sm:$0xff]   ;;  %v2157_v21 = vld [vmem:[#allocation8] ss:$8 sps:$4 sm:$0xff]  }
  0x6b   :  { %v2158_v23 = vld [vmem:[#allocation11 + $0xe0] ss:$16 sps:$4 sm:$0xff]   ;;  %v2160_v24 = vld [vmem:[#allocation11 + $0xe4] ss:$16 sps:$4 sm:$0xff]   ;;  %v2163_v25 = vld [vmem:[#allocation11 + $0xec] ss:$16 sps:$4 sm:$0xff]  }
  0x6c   :  { %330 = vmatpush1.bf16.msra.mxu1 %v2139_v9  ;;  %v2166_v26 = vld [vmem:[#allocation11 + $0xc4] ss:$16 sps:$4 sm:$0xff]   ;;  %782 = vmatprep.subr.bf16.mxu0 %v2160_v24  ;;  %v2164_v27 = vld [vmem:[#allocation11 + $0xc0] ss:$16 sps:$4 sm:$0xff]   ;;  %v1889_v50 = vld [vmem:[#allocation7] ss:$0 sm:$0xff] }
  0x6d   :  { %2109 = vmatmul.mubr.msk.bf16.vlgmr.msra.gmra.mxu0 %vm171_vm1, %v147_v8  ;;  %331 = vmatprep.subr.bf16.mxu1 %v2140_v10  ;;  %v2172_v28 = vld [vmem:[#allocation11 + $0xa4] ss:$16 sps:$4 sm:$0xff]   ;;  %v2170_v29 = vld [vmem:[#allocation11 + $0xa0] ss:$16 sps:$4 sm:$0xff]   ;;  %v2161_v59 = vld [vmem:[#allocation11 + $0xe8] ss:$16 sps:$4 sm:$0xff]  }
  0x6e   :  { %783 = vmatpush1.bf16.msra.mxu0 %v2158_v23  ;;  %v2178_v30 = vld [vmem:[#allocation11 + $0x84] ss:$16 sps:$4 sm:$0xff]   ;;  %v2176_v31 = vld [vmem:[#allocation11 + $0x80] ss:$16 sps:$4 sm:$0xff]   ;;  %v2169_v61 = vld [vmem:[#allocation11 + $0xcc] ss:$16 sps:$4 sm:$0xff]  }
  0x6f   :  { %784 = vmatprep.subr.bf16.mxu0 %v2166_v26  ;;  %v2184_v32 = vld [vmem:[#allocation11 + $0x64] ss:$16 sps:$4 sm:$0xff]   ;;  %v2182_v33 = vld [vmem:[#allocation11 + $0x60] ss:$16 sps:$4 sm:$0xff]   ;;  %v2167_v62 = vld [vmem:[#allocation11 + $0xc8] ss:$16 sps:$4 sm:$0xff]  }
  0x70   :  { %332 = vmatpush1.bf16.msra.mxu1 %v2142_v11  ;;  %v2190_v34 = vld [vmem:[#allocation11 + $0x44] ss:$16 sps:$4 sm:$0xff]   ;;  %v2188_v35 = vld [vmem:[#allocation11 + $0x40] ss:$16 sps:$4 sm:$0xff]   ;;  %v2175_v63 = vld [vmem:[#allocation11 + $0xac] ss:$16 sps:$4 sm:$0xff]  }
  0x71   :  { %333 = vmatprep.subr.bf16.mxu1 %v2143_v12  ;;  %v2196_v36 = vld [vmem:[#allocation11 + $0x24] ss:$16 sps:$4 sm:$0xff]   ;;  %v2194_v37 = vld [vmem:[#allocation11 + $0x20] ss:$16 sps:$4 sm:$0xff]   ;;  %v2173_v0 = vld [vmem:[#allocation11 + $0xa8] ss:$16 sps:$4 sm:$0xff]  }
  0x72   :  { %785 = vmatpush1.bf16.msra.mxu0 %v2164_v27  ;;  %v2202_v38 = vld [vmem:[#allocation11 + $0x4] ss:$16 sps:$4 sm:$0xff]   ;;  %v2200_v39 = vld [vmem:[#allocation11] ss:$16 sps:$4 sm:$0xff]   ;;  %v2181_v1 = vld [vmem:[#allocation11 + $0x8c] ss:$16 sps:$4 sm:$0xff]  }
  0x73   :  { %786 = vmatprep.subr.bf16.mxu0 %v2172_v28  ;;  %v2208_v40 = vld [vmem:[#allocation11 + $0x1e4] ss:$16 sps:$4 sm:$0xff]   ;;  %v2206_v41 = vld [vmem:[#allocation11 + $0x1e0] ss:$16 sps:$4 sm:$0xff]   ;;  %v2179_v2 = vld [vmem:[#allocation11 + $0x88] ss:$16 sps:$4 sm:$0xff]  }
  0x74   :  { %334 = vmatpush1.bf16.msra.mxu1 %v2145_v13  ;;  %v2214_v42 = vld [vmem:[#allocation11 + $0x1c4] ss:$16 sps:$4 sm:$0xff]   ;;  %v2212_v43 = vld [vmem:[#allocation11 + $0x1c0] ss:$16 sps:$4 sm:$0xff]   ;;  %v2187_v3 = vld [vmem:[#allocation11 + $0x6c] ss:$16 sps:$4 sm:$0xff]  }
  0x75   :  { %335 = vmatprep.subr.bf16.mxu1 %v2146_v14  ;;  %v2220_v44 = vld [vmem:[#allocation11 + $0x1a4] ss:$16 sps:$4 sm:$0xff]   ;;  %v2218_v45 = vld [vmem:[#allocation11 + $0x1a0] ss:$16 sps:$4 sm:$0xff]   ;;  %v2185_v4 = vld [vmem:[#allocation11 + $0x68] ss:$16 sps:$4 sm:$0xff]  }
  0x76   :  { %787 = vmatpush1.bf16.msra.mxu0 %v2170_v29  ;;  %v2226_v46 = vld [vmem:[#allocation11 + $0x184] ss:$16 sps:$4 sm:$0xff]   ;;  %v2224_v47 = vld [vmem:[#allocation11 + $0x180] ss:$16 sps:$4 sm:$0xff]   ;;  %v2193_v5 = vld [vmem:[#allocation11 + $0x4c] ss:$16 sps:$4 sm:$0xff]  }
  0x77   :  { %788 = vmatprep.subr.bf16.mxu0 %v2178_v30  ;;  %v2232_v48 = vld [vmem:[#allocation11 + $0x164] ss:$16 sps:$4 sm:$0xff]   ;;  %v2230_v49 = vld [vmem:[#allocation11 + $0x160] ss:$16 sps:$4 sm:$0xff]   ;;  %v2191_v6 = vld [vmem:[#allocation11 + $0x48] ss:$16 sps:$4 sm:$0xff]  }
  0x78   :  { %336 = vmatpush1.bf16.msra.mxu1 %v2148_v15  ;;  %v2199_v7 = vld [vmem:[#allocation11 + $0x2c] ss:$16 sps:$4 sm:$0xff]   ;;  %v2197_v8 = vld [vmem:[#allocation11 + $0x28] ss:$16 sps:$4 sm:$0xff]   ;;  %v2236_v23 = vld [vmem:[#allocation11 + $0x140] ss:$16 sps:$4 sm:$0xff]  }
  0x79   :  { %337 = vmatprep.subr.bf16.mxu1 %v2149_v16  ;;  %v2205_v9 = vld [vmem:[#allocation11 + $0xc] ss:$16 sps:$4 sm:$0xff]   ;;  %v2203_v10 = vld [vmem:[#allocation11 + $0x8] ss:$16 sps:$4 sm:$0xff]   ;;  %v2242_v27 = vld [vmem:[#allocation11 + $0x120] ss:$16 sps:$4 sm:$0xff]  }
  0x7a   :  { %789 = vmatpush1.bf16.msra.mxu0 %v2176_v31  ;;  %v2211_v11 = vld [vmem:[#allocation11 + $0x1ec] ss:$16 sps:$4 sm:$0xff]   ;;  %v2209_v12 = vld [vmem:[#allocation11 + $0x1e8] ss:$16 sps:$4 sm:$0xff]   ;;  %v2250_v29 = vld [vmem:[#allocation11 + $0x104] ss:$16 sps:$4 sm:$0xff]  }
  0x7b   :  { %790 = vmatprep.subr.bf16.mxu0 %v2184_v32  ;;  %v2217_v13 = vld [vmem:[#allocation11 + $0x1cc] ss:$16 sps:$4 sm:$0xff]   ;;  %v2215_v14 = vld [vmem:[#allocation11 + $0x1c8] ss:$16 sps:$4 sm:$0xff]   ;;  %v2248_v31 = vld [vmem:[#allocation11 + $0x100] ss:$16 sps:$4 sm:$0xff]  }
  0x7c   :  { %338 = vmatpush1.bf16.msra.mxu1 %v2151_v17  ;;  %v2223_v15 = vld [vmem:[#allocation11 + $0x1ac] ss:$16 sps:$4 sm:$0xff]   ;;  %v2221_v16 = vld [vmem:[#allocation11 + $0x1a8] ss:$16 sps:$4 sm:$0xff]  }
  0x7d   :  { %339 = vmatprep.subr.bf16.mxu1 %v2152_v18  ;;  %v2229_v17 = vld [vmem:[#allocation11 + $0x18c] ss:$16 sps:$4 sm:$0xff]   ;;  %v2227_v18 = vld [vmem:[#allocation11 + $0x188] ss:$16 sps:$4 sm:$0xff]  }
  0x7e   :  { %791 = vmatpush1.bf16.msra.mxu0 %v2182_v33  ;;  %v2241_v22 = vld [vmem:[#allocation11 + $0x14c] ss:$16 sps:$4 sm:$0xff]   ;;  %v2239_v24 = vld [vmem:[#allocation11 + $0x148] ss:$16 sps:$4 sm:$0xff]  }
  0x7f   :  { %792 = vmatprep.subr.bf16.mxu0 %v2190_v34  ;;  %v2247_v26 = vld [vmem:[#allocation11 + $0x12c] ss:$16 sps:$4 sm:$0xff]   ;;  %v2245_v28 = vld [vmem:[#allocation11 + $0x128] ss:$16 sps:$4 sm:$0xff]  }
  0x80   :  { %340 = vmatpush1.bf16.msra.mxu1 %v2154_v19  ;;  %v2235_v19 = vld [vmem:[#allocation11 + $0x16c] ss:$16 sps:$4 sm:$0xff]   ;;  %v2251_v32 = vld [vmem:[#allocation11 + $0x108] ss:$16 sps:$4 sm:$0xff]  }
  0x81   :  { %341 = vmatprep.subr.bf16.mxu1 %v2155_v20  ;;  %v2233_v20 = vld [vmem:[#allocation11 + $0x168] ss:$16 sps:$4 sm:$0xff]   ;;  %v2253_v30 = vld [vmem:[#allocation11 + $0x10c] ss:$16 sps:$4 sm:$0xff]  }
  0x82   :  { %793 = vmatpush1.bf16.msra.mxu0 %v2188_v35  ;;  %v2256_v33 = vld [vmem:[#allocation13 + $0x74] ss:$8 sps:$4 sm:$0xff]   ;;  %v237_v35 = vlaneseq }
  0x83   :  { %794 = vmatprep.subr.bf16.mxu0 %v2196_v36  ;;  %v2259_v34 = vld [vmem:[#allocation13 + $0x174] ss:$8 sps:$4 sm:$0xff]  }
  0x84   :  { %342 = vmatpush1.bf16.msra.mxu1 %v2157_v21  ;;  %v2238_v21 = vld [vmem:[#allocation11 + $0x144] ss:$16 sps:$4 sm:$0xff]   ;;  %v2757_v36 = vshrl.u32 %v237_v35, 7 }
  0x85   :  { %825 = vmatprep.subr.bf16.mxu1 %v2163_v25  ;;  %v2244_v25 = vld [vmem:[#allocation11 + $0x124] ss:$16 sps:$4 sm:$0xff]  }
  0x86   :  { %795 = vmatpush1.bf16.msra.mxu0 %v2194_v37  ;;  %v2760_v37 = vsub.s32 1, %v2757_v36  ;;  %v2325_v35 = vld [vmem:[#allocation13 + $0x1c4] ss:$8 sps:$4 sm:$0xff]  }
  0x87   :  { %796 = vmatprep.subr.bf16.mxu0 %v2202_v38  ;;  %v2763_v38 = vsub.s32 0, %v2757_v36 }
  0x8a   :  { %797 = vmatpush1.bf16.msra.mxu0 %v2200_v39  ;;  %v235_v39 = vld [vmem:[#allocation10] sm:$0x3] }
  0x8b   :  { %798 = vmatprep.subr.bf16.mxu0 %v2208_v40 }
  0x8e   :  { %799 = vmatpush2.bf16.msra.mxu0 %v2206_v41  ;;  %v244_v41 = vrot.slane %v235_v39, %v2760_v37 }
  0x8f   :  { %800 = vmatprep.subr.bf16.mxu0 %v2214_v42  ;;  %v240_v42 = vrot.slane %v235_v39, %v2763_v38  ;;  %v2320_v39 = vld [vmem:[#allocation13 + $0xc0] ss:$8 sps:$4 sm:$0xff]  }
  0x92   :  { %801 = vmatpush2.bf16.msra.mxu0 %v2212_v43 }
  0x93   :  { %802 = vmatprep.subr.bf16.mxu0 %v2220_v44 }
  0x96   :  { %803 = vmatpush2.bf16.msra.mxu0 %v2218_v45 }
  0x97   :  { %804 = vmatprep.subr.bf16.mxu0 %v2226_v46 }
  0x9a   :  { %805 = vmatpush2.bf16.msra.mxu0 %v2224_v47 }
  0x9b   :  { %806 = vmatprep.subr.bf16.mxu0 %v2232_v48 }
  0x9e   :  { %807 = vmatpush2.bf16.msra.mxu0 %v2230_v49 }
  0x9f   :  { %808 = vmatprep.subr.bf16.mxu0 %v2238_v21  ;;  %v2299_v21 = vld [vmem:[#allocation13 + $0x100] ss:$8 sps:$4 sm:$0xff]  }
  0xa2   :  { %809 = vmatpush2.bf16.msra.mxu0 %v2236_v23  ;;  %v2307_v23 = vld [vmem:[#allocation13 + $0x1f4] ss:$8 sps:$4 sm:$0xff]  }
  0xa3   :  { %810 = vmatprep.subr.bf16.mxu0 %v2244_v25  ;;  %v2305_v25 = vld [vmem:[#allocation13 + $0x1f0] ss:$8 sps:$4 sm:$0xff]  }
  0xa6   :  { %811 = vmatpush2.bf16.msra.mxu0 %v2242_v27  ;;  %v2313_v27 = vld [vmem:[#allocation13 + $0x1e4] ss:$8 sps:$4 sm:$0xff]  }
  0xa7   :  { %812 = vmatprep.subr.bf16.mxu0 %v2250_v29  ;;  %v2311_v29 = vld [vmem:[#allocation13 + $0x1e0] ss:$8 sps:$4 sm:$0xff]  }
  0xaa   :  { %813 = vmatpush2.bf16.msra.mxu0 %v2248_v31  ;;  %v2319_v31 = vld [vmem:[#allocation13 + $0x1d4] ss:$8 sps:$4 sm:$0xff]  }
  0xab   :  { %1276 = vmatprep.subr.bf16.mxu0 %v2256_v33  ;;  %v2317_v33 = vld [vmem:[#allocation13 + $0x1d0] ss:$8 sps:$4 sm:$0xff]  }
 0x12d   :  { %v209_v51 = vpop.f32.mrf.mxu0 }
 0x12e   :  { %v210_v53 = vadd.f32 %v1889_v50, %v209_v51 }
 0x12f   :  { %v2110_v52 = vpop.f32.mrf.mxu0 }
 0x130   :  { %v216_v57 = vmax.f32 %v210_v53, 0.0 }
 0x131   :  { %v212_v54 = vpop.f32.mrf.mxu0 }
 0x132   :  { %v213_v55 = vadd.f32 %v1889_v50, %v212_v54 }
 0x133   :  { %v2111_v56 = vpop.f32.mrf.mxu0 }
 0x134   :  { %v217_v58 = vmax.f32 %v213_v55, 0.0  ;;  %v2254_v55 = vld [vmem:[#allocation13 + $0x70] ss:$8 sps:$4 sm:$0xff]  }
 0x135   :  { %v2257_v56 = vld [vmem:[#allocation13 + $0x170] ss:$8 sps:$4 sm:$0xff]  }
 0x136   :  { %v218_v60 = vpack.c.bf16 %v217_v58, %v216_v57  ;;  %v2262_v58 = vld [vmem:[#allocation13 + $0x64] ss:$8 sps:$4 sm:$0xff]  }
 0x138   :  { %360 = vmatmul.mubr.bf16.vlgmr.msra.gmra.mxu1 %v218_v60  ;;  %v2260_v60 = vld [vmem:[#allocation13 + $0x60] ss:$8 sps:$4 sm:$0xff]  }
 0x139   :  { %826 = vmatpush1.bf16.msra.mxu1 %v2161_v59  ;;  %v2265_v59 = vld [vmem:[#allocation13 + $0x164] ss:$8 sps:$4 sm:$0xff]  }
 0x13a   :  { %827 = vmatprep.subr.bf16.mxu1 %v2169_v61  ;;  %v2263_v61 = vld [vmem:[#allocation13 + $0x160] ss:$8 sps:$4 sm:$0xff]  }
 0x13d   :  { %828 = vmatpush1.bf16.msra.mxu1 %v2167_v62  ;;  %v2268_v62 = vld [vmem:[#allocation13 + $0x54] ss:$8 sps:$4 sm:$0xff]  }
 0x13e   :  { %829 = vmatprep.subr.bf16.mxu1 %v2175_v63  ;;  %v2271_v63 = vld [vmem:[#allocation13 + $0x154] ss:$8 sps:$4 sm:$0xff]  }
 0x141   :  { %830 = vmatpush1.bf16.msra.mxu1 %v2173_v0  ;;  %v2266_v0 = vld [vmem:[#allocation13 + $0x50] ss:$8 sps:$4 sm:$0xff]  }
 0x142   :  { %831 = vmatprep.subr.bf16.mxu1 %v2181_v1  ;;  %v2269_v1 = vld [vmem:[#allocation13 + $0x150] ss:$8 sps:$4 sm:$0xff]  }
 0x145   :  { %832 = vmatpush1.bf16.msra.mxu1 %v2179_v2  ;;  %v2274_v2 = vld [vmem:[#allocation13 + $0x44] ss:$8 sps:$4 sm:$0xff]  }
 0x146   :  { %833 = vmatprep.subr.bf16.mxu1 %v2187_v3  ;;  %v2277_v3 = vld [vmem:[#allocation13 + $0x144] ss:$8 sps:$4 sm:$0xff]  }
 0x149   :  { %834 = vmatpush1.bf16.msra.mxu1 %v2185_v4  ;;  %v2272_v4 = vld [vmem:[#allocation13 + $0x40] ss:$8 sps:$4 sm:$0xff]  }
 0x14a   :  { %835 = vmatprep.subr.bf16.mxu1 %v2193_v5  ;;  %v2275_v5 = vld [vmem:[#allocation13 + $0x140] ss:$8 sps:$4 sm:$0xff]  }
 0x14d   :  { %836 = vmatpush1.bf16.msra.mxu1 %v2191_v6  ;;  %v2280_v6 = vld [vmem:[#allocation13 + $0x34] ss:$8 sps:$4 sm:$0xff]  }
 0x14e   :  { %837 = vmatprep.subr.bf16.mxu1 %v2199_v7  ;;  %v2283_v7 = vld [vmem:[#allocation13 + $0x134] ss:$8 sps:$4 sm:$0xff]  }
 0x151   :  { %838 = vmatpush1.bf16.msra.mxu1 %v2197_v8  ;;  %v2278_v8 = vld [vmem:[#allocation13 + $0x30] ss:$8 sps:$4 sm:$0xff]  }
 0x152   :  { %839 = vmatprep.subr.bf16.mxu1 %v2205_v9  ;;  %v2281_v9 = vld [vmem:[#allocation13 + $0x130] ss:$8 sps:$4 sm:$0xff]  }
 0x155   :  { %840 = vmatpush1.bf16.msra.mxu1 %v2203_v10  ;;  %v2286_v10 = vld [vmem:[#allocation13 + $0x24] ss:$8 sps:$4 sm:$0xff]  }
 0x156   :  { %841 = vmatprep.subr.bf16.mxu1 %v2211_v11  ;;  %v2289_v11 = vld [vmem:[#allocation13 + $0x124] ss:$8 sps:$4 sm:$0xff]  }
 0x159   :  { %842 = vmatpush2.bf16.msra.mxu1 %v2209_v12  ;;  %v2284_v12 = vld [vmem:[#allocation13 + $0x20] ss:$8 sps:$4 sm:$0xff]  }
 0x15a   :  { %843 = vmatprep.subr.bf16.mxu1 %v2217_v13  ;;  %v2287_v13 = vld [vmem:[#allocation13 + $0x120] ss:$8 sps:$4 sm:$0xff]  }
 0x15d   :  { %844 = vmatpush2.bf16.msra.mxu1 %v2215_v14  ;;  %v2292_v14 = vld [vmem:[#allocation13 + $0x14] ss:$8 sps:$4 sm:$0xff]  }
 0x15e   :  { %845 = vmatprep.subr.bf16.mxu1 %v2223_v15  ;;  %v2295_v15 = vld [vmem:[#allocation13 + $0x114] ss:$8 sps:$4 sm:$0xff]  }
 0x161   :  { %846 = vmatpush2.bf16.msra.mxu1 %v2221_v16  ;;  %v2290_v16 = vld [vmem:[#allocation13 + $0x10] ss:$8 sps:$4 sm:$0xff]  }
 0x162   :  { %847 = vmatprep.subr.bf16.mxu1 %v2229_v17  ;;  %v2293_v17 = vld [vmem:[#allocation13 + $0x110] ss:$8 sps:$4 sm:$0xff]  }
 0x165   :  { %848 = vmatpush2.bf16.msra.mxu1 %v2227_v18  ;;  %v2298_v18 = vld [vmem:[#allocation13 + $0x4] ss:$8 sps:$4 sm:$0xff]  }
 0x166   :  { %849 = vmatprep.subr.bf16.mxu1 %v2235_v19  ;;  %v2301_v19 = vld [vmem:[#allocation13 + $0x104] ss:$8 sps:$4 sm:$0xff]  }
 0x169   :  { %850 = vmatpush2.bf16.msra.mxu1 %v2233_v20  ;;  %v2296_v20 = vld [vmem:[#allocation13] ss:$8 sps:$4 sm:$0xff]  }
 0x16a   :  { %851 = vmatprep.subr.bf16.mxu1 %v2241_v22  ;;  %v2304_v22 = vld [vmem:[#allocation13 + $0xf4] ss:$8 sps:$4 sm:$0xff]  }
 0x16d   :  { %852 = vmatpush2.bf16.msra.mxu1 %v2239_v24  ;;  %v2302_v24 = vld [vmem:[#allocation13 + $0xf0] ss:$8 sps:$4 sm:$0xff]  }
 0x16e   :  { %853 = vmatprep.subr.bf16.mxu1 %v2247_v26  ;;  %v2310_v26 = vld [vmem:[#allocation13 + $0xe4] ss:$8 sps:$4 sm:$0xff]  }
 0x171   :  { %854 = vmatpush2.bf16.msra.mxu1 %v2245_v28  ;;  %v2308_v28 = vld [vmem:[#allocation13 + $0xe0] ss:$8 sps:$4 sm:$0xff]  }
 0x172   :  { %855 = vmatprep.subr.bf16.mxu1 %v2253_v30  ;;  %v2316_v30 = vld [vmem:[#allocation13 + $0xd4] ss:$8 sps:$4 sm:$0xff]  }
 0x175   :  { %856 = vmatpush2.bf16.msra.mxu1 %v2251_v32  ;;  %v2314_v32 = vld [vmem:[#allocation13 + $0xd0] ss:$8 sps:$4 sm:$0xff]  }
 0x176   :  { %1319 = vmatprep.subr.bf16.mxu1 %v2259_v34  ;;  %v2322_v34 = vld [vmem:[#allocation13 + $0xc4] ss:$8 sps:$4 sm:$0xff]  }
 0x1f8   :  { %v361_v40 = vpop.f32.mrf.mxu1 }
 0x1f9   :  { %v362_v47 = vadd.f32 %v361_v40, %v240_v42  ;;  %v2323_v40 = vld [vmem:[#allocation13 + $0x1c0] ss:$8 sps:$4 sm:$0xff]  }
 0x1fa   :  { %v363_v43 = vpop.f32.mrf.mxu1 }
 0x1fb   :  { %v364_v45 = vadd.f32 %v363_v43, %v244_v41  ;;  %v370_v53 = vmax.f32 %v362_v47, 0.0  ;;  %v2326_v43 = vld [vmem:[#allocation13 + $0xb0] ss:$8 sps:$4 sm:$0xff]   ;;  %v2332_v47 = vld [vmem:[#allocation13 + $0xa0] ss:$8 sps:$4 sm:$0xff]  }
 0x1fc   :  { %v365_v44 = vpop.f32.mrf.mxu1 }
 0x1fd   :  { %v366_v46 = vadd.f32 %v365_v44, %v240_v42  ;;  %v371_v51 = vmax.f32 %v364_v45, 0.0  ;;  %v2331_v42 = vld [vmem:[#allocation13 + $0x1b4] ss:$8 sps:$4 sm:$0xff]   ;;  %v2329_v44 = vld [vmem:[#allocation13 + $0x1b0] ss:$8 sps:$4 sm:$0xff]  }
 0x1fe   :  { %v367_v48 = vpop.f32.mrf.mxu1  ;;  %v2334_v45 = vld [vmem:[#allocation13 + $0xa4] ss:$8 sps:$4 sm:$0xff]  }
 0x1ff   :  { %v368_v49 = vadd.f32 %v367_v48, %v244_v41  ;;  %v372_v50 = vmax.f32 %v366_v46, 0.0  ;;  %v2328_v41 = vld [vmem:[#allocation13 + $0xb4] ss:$8 sps:$4 sm:$0xff]   ;;  %v2337_v46 = vld [vmem:[#allocation13 + $0x1a4] ss:$8 sps:$4 sm:$0xff]  }
 0x200   :  { %v2335_v48 = vld [vmem:[#allocation13 + $0x1a0] ss:$8 sps:$4 sm:$0xff]  }
 0x201   :  { %v373_v52 = vmax.f32 %v368_v49, 0.0  ;;  %v374_v57 = vpack.c.bf16 %v372_v50, %v370_v53  ;;  %v2340_v49 = vld [vmem:[#allocation13 + $0x94] ss:$8 sps:$4 sm:$0xff]   ;;  %v2346_v53 = vld [vmem:[#allocation13 + $0x84] ss:$8 sps:$4 sm:$0xff]  }
 0x202   :  { %v2343_v50 = vld [vmem:[#allocation13 + $0x194] ss:$8 sps:$4 sm:$0xff]  }
 0x203   :  { %v375_v54 = vpack.c.bf16 %v373_v52, %v371_v51  ;;  %v2338_v51 = vld [vmem:[#allocation13 + $0x90] ss:$8 sps:$4 sm:$0xff]  }
 0x204   :  { %v2341_v52 = vld [vmem:[#allocation13 + $0x190] ss:$8 sps:$4 sm:$0xff]  }
 0x205   :  { %814 = vmatprep.mubr.bf16.mxu0 %v375_v54  ;;  %857 = vmatprep.mubr.bf16.mxu1 %v375_v54  ;;  %v2349_v54 = vld [vmem:[#allocation13 + $0x184] ss:$8 sps:$4 sm:$0xff]  }
 0x206   :  { %815 = vmatmul.mubr.bf16.vlgmr.msra.gmra.mxu0 %v374_v57  ;;  %858 = vmatmul.mubr.bf16.vlgmr.msra.gmra.mxu1 %v374_v57  ;;  %v2352_v57 = vld [vmem:[#allocation14 + $0xe4] ss:$16 sps:$4 sm:$0xff]  }
 0x207   :  { %1277 = vmatpush1.bf16.msra.mxu0 %v2254_v55  ;;  %1320 = vmatpush1.bf16.msra.mxu1 %v2257_v56  ;;  %v2344_v55 = vld [vmem:[#allocation13 + $0x80] ss:$8 sps:$4 sm:$0xff]  }
 0x208   :  { %1278 = vmatprep.subr.bf16.mxu0 %v2262_v58  ;;  %1321 = vmatprep.subr.bf16.mxu1 %v2265_v59  ;;  %v2347_v56 = vld [vmem:[#allocation13 + $0x180] ss:$8 sps:$4 sm:$0xff]   ;;  %v2355_v58 = vld [vmem:[#allocation14 + $0xec] ss:$16 sps:$4 sm:$0xff]   ;;  %v456_v59 = vsub.s32 3, %v2757_v36 }
 0x20b   :  { %1279 = vmatpush1.bf16.msra.mxu0 %v2260_v60  ;;  %1322 = vmatpush1.bf16.msra.mxu1 %v2263_v61  ;;  %v452_v60 = vsub.s32 2, %v2757_v36  ;;  %v440_v61 = vld [vmem:[%s2801_s6] sm:$0xf] }
 0x20c   :  { %1280 = vmatprep.subr.bf16.mxu0 %v2268_v62  ;;  %1323 = vmatprep.subr.bf16.mxu1 %v2271_v63 }
 0x20f   :  { %1281 = vmatpush1.bf16.msra.mxu0 %v2266_v0  ;;  %1324 = vmatpush1.bf16.msra.mxu1 %v2269_v1  ;;  %v449_v0 = vrot.slane %v440_v61, %v2760_v37  ;;  %v457_v1 = vrot.slane %v440_v61, %v456_v59 }
 0x210   :  { %1282 = vmatprep.subr.bf16.mxu0 %v2274_v2  ;;  %1325 = vmatprep.subr.bf16.mxu1 %v2277_v3  ;;  %v445_v2 = vrot.slane %v440_v61, %v2763_v38  ;;  %v453_v3 = vrot.slane %v440_v61, %v452_v60  ;;  %v2394_v61 = vld [vmem:[#allocation14 + $0x4] ss:$16 sps:$4 sm:$0xff]  }
 0x213   :  { %1283 = vmatpush1.bf16.msra.mxu0 %v2272_v4  ;;  %1326 = vmatpush1.bf16.msra.mxu1 %v2275_v5 }
 0x214   :  { %1284 = vmatprep.subr.bf16.mxu0 %v2280_v6  ;;  %1327 = vmatprep.subr.bf16.mxu1 %v2283_v7 }
 0x217   :  { %1285 = vmatpush1.bf16.msra.mxu0 %v2278_v8  ;;  %1328 = vmatpush1.bf16.msra.mxu1 %v2281_v9 }
 0x218   :  { %1286 = vmatprep.subr.bf16.mxu0 %v2286_v10  ;;  %1329 = vmatprep.subr.bf16.mxu1 %v2289_v11 }
 0x21b   :  { %1287 = vmatpush1.bf16.msra.mxu0 %v2284_v12  ;;  %1330 = vmatpush1.bf16.msra.mxu1 %v2287_v13 }
 0x21c   :  { %1288 = vmatprep.subr.bf16.mxu0 %v2292_v14  ;;  %1331 = vmatprep.subr.bf16.mxu1 %v2295_v15 }
 0x21f   :  { %1289 = vmatpush1.bf16.msra.mxu0 %v2290_v16  ;;  %1332 = vmatpush1.bf16.msra.mxu1 %v2293_v17 }
 0x220   :  { %1290 = vmatprep.subr.bf16.mxu0 %v2298_v18  ;;  %1333 = vmatprep.subr.bf16.mxu1 %v2301_v19 }
 0x223   :  { %1291 = vmatpush1.bf16.msra.mxu0 %v2296_v20  ;;  %1334 = vmatpush1.bf16.msra.mxu1 %v2299_v21 }
 0x224   :  { %1292 = vmatprep.subr.bf16.mxu0 %v2304_v22  ;;  %1335 = vmatprep.subr.bf16.mxu1 %v2307_v23 }
 0x227   :  { %1293 = vmatpush2.bf16.msra.mxu0 %v2302_v24  ;;  %1336 = vmatpush2.bf16.msra.mxu1 %v2305_v25 }
 0x228   :  { %1294 = vmatprep.subr.bf16.mxu0 %v2310_v26  ;;  %1337 = vmatprep.subr.bf16.mxu1 %v2313_v27 }
 0x22b   :  { %1295 = vmatpush2.bf16.msra.mxu0 %v2308_v28  ;;  %1338 = vmatpush2.bf16.msra.mxu1 %v2311_v29  ;;  %v2350_v28 = vld [vmem:[#allocation14 + $0xe0] ss:$16 sps:$4 sm:$0xff]   ;;  %v2353_v29 = vld [vmem:[#allocation14 + $0xe8] ss:$16 sps:$4 sm:$0xff]  }
 0x22c   :  { %1296 = vmatprep.subr.bf16.mxu0 %v2316_v30  ;;  %1339 = vmatprep.subr.bf16.mxu1 %v2319_v31 }
 0x22f   :  { %1297 = vmatpush2.bf16.msra.mxu0 %v2314_v32  ;;  %1340 = vmatpush2.bf16.msra.mxu1 %v2317_v33  ;;  %v2358_v32 = vld [vmem:[#allocation14 + $0xc4] ss:$16 sps:$4 sm:$0xff]   ;;  %v2361_v33 = vld [vmem:[#allocation14 + $0xcc] ss:$16 sps:$4 sm:$0xff]  }
 0x230   :  { %1298 = vmatprep.subr.bf16.mxu0 %v2322_v34  ;;  %1341 = vmatprep.subr.bf16.mxu1 %v2325_v35  ;;  %v2356_v34 = vld [vmem:[#allocation14 + $0xc0] ss:$16 sps:$4 sm:$0xff]   ;;  %v2359_v35 = vld [vmem:[#allocation14 + $0xc8] ss:$16 sps:$4 sm:$0xff]  }
 0x233   :  { %1299 = vmatpush2.bf16.msra.mxu0 %v2320_v39  ;;  %1342 = vmatpush2.bf16.msra.mxu1 %v2323_v40  ;;  %v2364_v39 = vld [vmem:[#allocation14 + $0xa4] ss:$16 sps:$4 sm:$0xff]   ;;  %v2367_v40 = vld [vmem:[#allocation14 + $0xac] ss:$16 sps:$4 sm:$0xff]  }
 0x234   :  { %1300 = vmatprep.subr.bf16.mxu0 %v2328_v41  ;;  %1343 = vmatprep.subr.bf16.mxu1 %v2331_v42  ;;  %v2362_v41 = vld [vmem:[#allocation14 + $0xa0] ss:$16 sps:$4 sm:$0xff]   ;;  %v2365_v42 = vld [vmem:[#allocation14 + $0xa8] ss:$16 sps:$4 sm:$0xff]  }
 0x237   :  { %1301 = vmatpush2.bf16.msra.mxu0 %v2326_v43  ;;  %1344 = vmatpush2.bf16.msra.mxu1 %v2329_v44  ;;  %v2370_v43 = vld [vmem:[#allocation14 + $0x84] ss:$16 sps:$4 sm:$0xff]   ;;  %v2373_v44 = vld [vmem:[#allocation14 + $0x8c] ss:$16 sps:$4 sm:$0xff]  }
 0x238   :  { %1302 = vmatprep.subr.bf16.mxu0 %v2334_v45  ;;  %1345 = vmatprep.subr.bf16.mxu1 %v2337_v46  ;;  %v2368_v45 = vld [vmem:[#allocation14 + $0x80] ss:$16 sps:$4 sm:$0xff]   ;;  %v2371_v46 = vld [vmem:[#allocation14 + $0x88] ss:$16 sps:$4 sm:$0xff]  }
 0x23b   :  { %1303 = vmatpush2.bf16.msra.mxu0 %v2332_v47  ;;  %1346 = vmatpush2.bf16.msra.mxu1 %v2335_v48  ;;  %v2376_v47 = vld [vmem:[#allocation14 + $0x64] ss:$16 sps:$4 sm:$0xff]   ;;  %v2379_v48 = vld [vmem:[#allocation14 + $0x6c] ss:$16 sps:$4 sm:$0xff]  }
 0x23c   :  { %1304 = vmatprep.subr.bf16.mxu0 %v2340_v49  ;;  %1347 = vmatprep.subr.bf16.mxu1 %v2343_v50  ;;  %v2374_v49 = vld [vmem:[#allocation14 + $0x60] ss:$16 sps:$4 sm:$0xff]   ;;  %v2377_v50 = vld [vmem:[#allocation14 + $0x68] ss:$16 sps:$4 sm:$0xff]  }
 0x23f   :  { %1305 = vmatpush2.bf16.msra.mxu0 %v2338_v51  ;;  %1348 = vmatpush2.bf16.msra.mxu1 %v2341_v52  ;;  %v2382_v51 = vld [vmem:[#allocation14 + $0x44] ss:$16 sps:$4 sm:$0xff]   ;;  %v2385_v52 = vld [vmem:[#allocation14 + $0x4c] ss:$16 sps:$4 sm:$0xff]  }
 0x240   :  { %1306 = vmatprep.subr.bf16.mxu0 %v2346_v53  ;;  %1349 = vmatprep.subr.bf16.mxu1 %v2349_v54  ;;  %v2380_v53 = vld [vmem:[#allocation14 + $0x40] ss:$16 sps:$4 sm:$0xff]   ;;  %v2383_v54 = vld [vmem:[#allocation14 + $0x48] ss:$16 sps:$4 sm:$0xff]  }
 0x243   :  { %1307 = vmatpush2.bf16.msra.mxu0 %v2344_v55  ;;  %1350 = vmatpush2.bf16.msra.mxu1 %v2347_v56  ;;  %v2388_v55 = vld [vmem:[#allocation14 + $0x24] ss:$16 sps:$4 sm:$0xff]   ;;  %v2391_v56 = vld [vmem:[#allocation14 + $0x2c] ss:$16 sps:$4 sm:$0xff]  }
 0x244   :  { %1774 = vmatprep.subr.bf16.mxu0 %v2352_v57  ;;  %1817 = vmatprep.subr.bf16.mxu1 %v2355_v58  ;;  %v2386_v57 = vld [vmem:[#allocation14 + $0x20] ss:$16 sps:$4 sm:$0xff]   ;;  %v2389_v58 = vld [vmem:[#allocation14 + $0x28] ss:$16 sps:$4 sm:$0xff]  }
 0x2c6   :  { %v816_v62 = vpop.f32.mrf.mxu0  ;;  %v859_v63 = vpop.f32.mrf.mxu1 }
 0x2c7   :  { %v817_v12 = vadd.f32 %v816_v62, %v445_v2  ;;  %v860_v13 = vadd.f32 %v859_v63, %v453_v3  ;;  %v2397_v62 = vld [vmem:[#allocation14 + $0xc] ss:$16 sps:$4 sm:$0xff]   ;;  %v2392_v63 = vld [vmem:[#allocation14] ss:$16 sps:$4 sm:$0xff]  }
 0x2c8   :  { %v818_v4 = vpop.f32.mrf.mxu0  ;;  %v861_v5 = vpop.f32.mrf.mxu1 }
 0x2c9   :  { %v819_v8 = vadd.f32 %v818_v4, %v449_v0  ;;  %v862_v9 = vadd.f32 %v861_v5, %v457_v1  ;;  %v868_v24 = vmax.f32 %v817_v12, 0.0  ;;  %v870_v25 = vmax.f32 %v860_v13, 0.0  ;;  %v2401_v4 = vld [vmem:[#allocation14 + $0x1e8] ss:$16 sps:$4 sm:$0xff]   ;;  %v2406_v5 = vld [vmem:[#allocation14 + $0x1c4] ss:$16 sps:$4 sm:$0xff]  }
 0x2ca   :  { %v820_v6 = vpop.f32.mrf.mxu0  ;;  %v863_v7 = vpop.f32.mrf.mxu1  ;;  %v2413_v12 = vld [vmem:[#allocation14 + $0x1a8] ss:$16 sps:$4 sm:$0xff]   ;;  %v2418_v13 = vld [vmem:[#allocation14 + $0x184] ss:$16 sps:$4 sm:$0xff]  }
 0x2cb   :  { %v821_v10 = vadd.f32 %v820_v6, %v445_v2  ;;  %v864_v11 = vadd.f32 %v863_v7, %v453_v3  ;;  %v869_v20 = vmax.f32 %v819_v8, 0.0  ;;  %v871_v21 = vmax.f32 %v862_v9, 0.0  ;;  %v2403_v2 = vld [vmem:[#allocation14 + $0x1ec] ss:$16 sps:$4 sm:$0xff]   ;;  %v2398_v3 = vld [vmem:[#allocation14 + $0x1e0] ss:$16 sps:$4 sm:$0xff]  }
 0x2cc   :  { %v822_v14 = vpop.f32.mrf.mxu0  ;;  %v865_v15 = vpop.f32.mrf.mxu1  ;;  %v2409_v6 = vld [vmem:[#allocation14 + $0x1cc] ss:$16 sps:$4 sm:$0xff]   ;;  %v2404_v7 = vld [vmem:[#allocation14 + $0x1c0] ss:$16 sps:$4 sm:$0xff]   ;;  %v2407_v8 = vld [vmem:[#allocation14 + $0x1c8] ss:$16 sps:$4 sm:$0xff]  }
 0x2cd   :  { %v823_v16 = vadd.f32 %v822_v14, %v449_v0  ;;  %v866_v17 = vadd.f32 %v865_v15, %v457_v1  ;;  %v872_v18 = vmax.f32 %v821_v10, 0.0  ;;  %v874_v19 = vmax.f32 %v864_v11, 0.0  ;;  %v2395_v0 = vld [vmem:[#allocation14 + $0x8] ss:$16 sps:$4 sm:$0xff]   ;;  %v2400_v1 = vld [vmem:[#allocation14 + $0x1e4] ss:$16 sps:$4 sm:$0xff]  }
 0x2ce   :  { %v2412_v9 = vld [vmem:[#allocation14 + $0x1a4] ss:$16 sps:$4 sm:$0xff]   ;;  %v2415_v10 = vld [vmem:[#allocation14 + $0x1ac] ss:$16 sps:$4 sm:$0xff]   ;;  %v2410_v11 = vld [vmem:[#allocation14 + $0x1a0] ss:$16 sps:$4 sm:$0xff]  }
 0x2cf   :  { %v873_v22 = vmax.f32 %v823_v16, 0.0  ;;  %v875_v23 = vmax.f32 %v866_v17, 0.0  ;;  %v876_v30 = vpack.c.bf16 %v872_v18, %v868_v24  ;;  %v878_v31 = vpack.c.bf16 %v874_v19, %v870_v25  ;;  %v2421_v14 = vld [vmem:[#allocation14 + $0x18c] ss:$16 sps:$4 sm:$0xff]   ;;  %v2416_v15 = vld [vmem:[#allocation14 + $0x180] ss:$16 sps:$4 sm:$0xff]  }
 0x2d0   :  { %v2419_v16 = vld [vmem:[#allocation14 + $0x188] ss:$16 sps:$4 sm:$0xff]   ;;  %v2424_v17 = vld [vmem:[#allocation14 + $0x164] ss:$16 sps:$4 sm:$0xff]   ;;  %v2427_v18 = vld [vmem:[#allocation14 + $0x16c] ss:$16 sps:$4 sm:$0xff]  }
 0x2d1   :  { %v877_v26 = vpack.c.bf16 %v873_v22, %v869_v20  ;;  %v879_v27 = vpack.c.bf16 %v875_v23, %v871_v21  ;;  %v2422_v19 = vld [vmem:[#allocation14 + $0x160] ss:$16 sps:$4 sm:$0xff]   ;;  %v2425_v20 = vld [vmem:[#allocation14 + $0x168] ss:$16 sps:$4 sm:$0xff]   ;;  %v2430_v21 = vld [vmem:[#allocation14 + $0x144] ss:$16 sps:$4 sm:$0xff]  }
 0x2d2   :  { %v2433_v22 = vld [vmem:[#allocation14 + $0x14c] ss:$16 sps:$4 sm:$0xff]   ;;  %v2428_v23 = vld [vmem:[#allocation14 + $0x140] ss:$16 sps:$4 sm:$0xff]   ;;  %v2431_v24 = vld [vmem:[#allocation14 + $0x148] ss:$16 sps:$4 sm:$0xff]  }
 0x2d3   :  { %1308 = vmatprep.mubr.bf16.mxu0 %v877_v26  ;;  %1351 = vmatprep.mubr.bf16.mxu1 %v879_v27  ;;  %v2436_v25 = vld [vmem:[#allocation14 + $0x124] ss:$16 sps:$4 sm:$0xff]   ;;  %v2439_v26 = vld [vmem:[#allocation14 + $0x12c] ss:$16 sps:$4 sm:$0xff]   ;;  %v2434_v27 = vld [vmem:[#allocation14 + $0x120] ss:$16 sps:$4 sm:$0xff]  }
 0x2d4   :  { %1309 = vmatmul.mubr.bf16.vlgmr.msra.gmra.mxu0 %v876_v30  ;;  %1352 = vmatmul.mubr.bf16.vlgmr.msra.gmra.mxu1 %v878_v31  ;;  %v2445_v30 = vld [vmem:[#allocation14 + $0x10c] ss:$16 sps:$4 sm:$0xff]   ;;  %v2440_v31 = vld [vmem:[#allocation14 + $0x100] ss:$16 sps:$4 sm:$0xff]  }
 0x2d5   :  { %1775 = vmatpush1.bf16.msra.mxu0 %v2350_v28  ;;  %1818 = vmatpush1.bf16.msra.mxu1 %v2353_v29  ;;  %v2437_v28 = vld [vmem:[#allocation14 + $0x128] ss:$16 sps:$4 sm:$0xff]   ;;  %v2442_v29 = vld [vmem:[#allocation14 + $0x104] ss:$16 sps:$4 sm:$0xff]  }
 0x2d6   :  { %1776 = vmatprep.subr.bf16.mxu0 %v2358_v32  ;;  %1819 = vmatprep.subr.bf16.mxu1 %v2361_v33  ;;  %v2443_v32 = vld [vmem:[#allocation14 + $0x108] ss:$16 sps:$4 sm:$0xff]   ;;  %v944_v33 = vld [vmem:[%s2803_s8] sm:$0x3] }
 0x2d9   :  { %1777 = vmatpush1.bf16.msra.mxu0 %v2356_v34  ;;  %1820 = vmatpush1.bf16.msra.mxu1 %v2359_v35  ;;  %v953_v34 = vrot.slane %v944_v33, %v2760_v37  ;;  %v949_v35 = vrot.slane %v944_v33, %v2763_v38 }
 0x2da   :  { %1778 = vmatprep.subr.bf16.mxu0 %v2364_v39  ;;  %1821 = vmatprep.subr.bf16.mxu1 %v2367_v40 }
 0x2dd   :  { %1779 = vmatpush1.bf16.msra.mxu0 %v2362_v41  ;;  %1822 = vmatpush1.bf16.msra.mxu1 %v2365_v42 }
 0x2de   :  { %1780 = vmatprep.subr.bf16.mxu0 %v2370_v43  ;;  %1823 = vmatprep.subr.bf16.mxu1 %v2373_v44 }
 0x2e1   :  { %1781 = vmatpush1.bf16.msra.mxu0 %v2368_v45  ;;  %1824 = vmatpush1.bf16.msra.mxu1 %v2371_v46 }
 0x2e2   :  { %1782 = vmatprep.subr.bf16.mxu0 %v2376_v47  ;;  %1825 = vmatprep.subr.bf16.mxu1 %v2379_v48 }
 0x2e5   :  { %1783 = vmatpush1.bf16.msra.mxu0 %v2374_v49  ;;  %1826 = vmatpush1.bf16.msra.mxu1 %v2377_v50 }
 0x2e6   :  { %1784 = vmatprep.subr.bf16.mxu0 %v2382_v51  ;;  %1827 = vmatprep.subr.bf16.mxu1 %v2385_v52 }
 0x2e9   :  { %1785 = vmatpush1.bf16.msra.mxu0 %v2380_v53  ;;  %1828 = vmatpush1.bf16.msra.mxu1 %v2383_v54 }
 0x2ea   :  { %1786 = vmatprep.subr.bf16.mxu0 %v2388_v55  ;;  %1829 = vmatprep.subr.bf16.mxu1 %v2391_v56 }
 0x2ed   :  { %1787 = vmatpush1.bf16.msra.mxu0 %v2386_v57  ;;  %1830 = vmatpush1.bf16.msra.mxu1 %v2389_v58 }
 0x2ee   :  { %1788 = vmatprep.subr.bf16.mxu0 %v2394_v61  ;;  %1831 = vmatprep.subr.bf16.mxu1 %v2397_v62 }
 0x2f1   :  { %1789 = vmatpush1.bf16.msra.mxu0 %v2392_v63  ;;  %1832 = vmatpush1.bf16.msra.mxu1 %v2395_v0  ;;  %v1432_v63 = vld [vmem:[%s2805_s10] sm:$0xf]  ;;  %s2655_s10 = smov [#allocation16]  }
 0x2f2   :  { %1790 = vmatprep.subr.bf16.mxu0 %v2400_v1  ;;  %1833 = vmatprep.subr.bf16.mxu1 %v2403_v2  ;;  %v1437_v0 = vrot.slane %v1432_v63, %v2763_v38  ;;  %v1445_v1 = vrot.slane %v1432_v63, %v452_v60  ;;  %v1441_v2 = vrot.slane %v1432_v63, %v2760_v37  ;;  %s1873_s14 = sshll.u32 %s2655_s10, 4  ;;  %s1874_s14 = int_to_ptr.vmem [resolvable:$true] %s1873_s14 }
 0x2f3   :  { %s2606_s15 = scalar_lea.vmem %s1874_s14, 1024  ;;  %p2611_p13 = scmp.lt.s32.totalorder %s1874_s14, %s1874_s14 }
 0x2f4   :  { %p2607_p12 = scmp.ne.s32.totalorder %s1874_s14, %s2606_s15  ;;  %p2612_p0 = scmp.lt.s32.totalorder %s2606_s15, %s2606_s15 }
 0x2f5   :  { %1791 = vmatpush2.bf16.msra.mxu0 %v2398_v3  ;;  %1834 = vmatpush2.bf16.msra.mxu1 %v2401_v4  ;;  %v1449_v3 = vrot.slane %v1432_v63, %v456_v59 }
 0x2f6   :  { %1792 = vmatprep.subr.bf16.mxu0 %v2406_v5  ;;  %1835 = vmatprep.subr.bf16.mxu1 %v2409_v6  ;;  %p2613_p1 = por %p2612_p0, %p2611_p13 }
 0x2f8   :  { %p2614_p2 = pnand %p2613_p1, %p2607_p12 }
 0x2f9   :  { %1793 = vmatpush2.bf16.msra.mxu0 %v2404_v7  ;;  %1836 = vmatpush2.bf16.msra.mxu1 %v2407_v8 }
 0x2fa   :  { %1794 = vmatprep.subr.bf16.mxu0 %v2412_v9  ;;  %1837 = vmatprep.subr.bf16.mxu1 %v2415_v10 }
 0x2fd   :  { %1795 = vmatpush2.bf16.msra.mxu0 %v2410_v11  ;;  %1838 = vmatpush2.bf16.msra.mxu1 %v2413_v12 }
 0x2fe   :  { %1796 = vmatprep.subr.bf16.mxu0 %v2418_v13  ;;  %1839 = vmatprep.subr.bf16.mxu1 %v2421_v14 }
 0x301   :  { %1797 = vmatpush2.bf16.msra.mxu0 %v2416_v15  ;;  %1840 = vmatpush2.bf16.msra.mxu1 %v2419_v16 }
 0x302   :  { %1798 = vmatprep.subr.bf16.mxu0 %v2424_v17  ;;  %1841 = vmatprep.subr.bf16.mxu1 %v2427_v18 }
 0x305   :  { %1799 = vmatpush2.bf16.msra.mxu0 %v2422_v19  ;;  %1842 = vmatpush2.bf16.msra.mxu1 %v2425_v20 }
 0x306   :  { %1800 = vmatprep.subr.bf16.mxu0 %v2430_v21  ;;  %1843 = vmatprep.subr.bf16.mxu1 %v2433_v22 }
 0x309   :  { %1801 = vmatpush2.bf16.msra.mxu0 %v2428_v23  ;;  %1844 = vmatpush2.bf16.msra.mxu1 %v2431_v24 }
 0x30a   :  { %1802 = vmatprep.subr.bf16.mxu0 %v2436_v25  ;;  %1845 = vmatprep.subr.bf16.mxu1 %v2439_v26 }
 0x30d   :  { %1803 = vmatpush2.bf16.msra.mxu0 %v2434_v27  ;;  %1846 = vmatpush2.bf16.msra.mxu1 %v2437_v28 }
 0x30e   :  { %1804 = vmatprep.subr.bf16.mxu0 %v2442_v29  ;;  %1847 = vmatprep.subr.bf16.mxu1 %v2445_v30 }
 0x311   :  { %1805 = vmatpush2.bf16.msra.mxu0 %v2440_v31  ;;  %1848 = vmatpush2.bf16.msra.mxu1 %v2443_v32 }
 0x394   :  { %v1310_v39 = vpop.f32.mrf.mxu0  ;;  %v1353_v40 = vpop.f32.mrf.mxu1 }
 0x395   :  { %v1311_v44 = vadd.f32 %v1310_v39, %v949_v35 }
 0x396   :  { %v1312_v41 = vpop.f32.mrf.mxu0  ;;  %v1355_v42 = vpop.f32.mrf.mxu1 }
 0x397   :  { %v1313_v43 = vadd.f32 %v1312_v41, %v953_v34  ;;  %v1354_v52 = vadd.f32 %v1353_v40, %v1311_v44 }
 0x398   :  { %v1314_v45 = vpop.f32.mrf.mxu0  ;;  %v1357_v46 = vpop.f32.mrf.mxu1 }
 0x399   :  { %v1315_v47 = vadd.f32 %v1314_v45, %v949_v35  ;;  %v1356_v49 = vadd.f32 %v1355_v42, %v1313_v43  ;;  %v1362_v58 = vmax.f32 %v1354_v52, 0.0 }
 0x39a   :  { %v1316_v48 = vpop.f32.mrf.mxu0  ;;  %v1359_v53 = vpop.f32.mrf.mxu1 }
 0x39b   :  { %v1358_v50 = vadd.f32 %v1357_v46, %v1315_v47  ;;  %v1317_v51 = vadd.f32 %v1316_v48, %v953_v34  ;;  %v1363_v56 = vmax.f32 %v1356_v49, 0.0 }
 0x39d   :  { %v1360_v54 = vadd.f32 %v1359_v53, %v1317_v51  ;;  %v1364_v55 = vmax.f32 %v1358_v50, 0.0 }
 0x39f   :  { %v1365_v57 = vmax.f32 %v1360_v54, 0.0  ;;  %v1366_v62 = vpack.c.bf16 %v1364_v55, %v1362_v58 }
 0x3a1   :  { %v1367_v61 = vpack.c.bf16 %v1365_v57, %v1363_v56 }
 0x3a3   :  { %1806 = vmatprep.mubr.bf16.mxu0 %v1367_v61  ;;  %1849 = vmatprep.mubr.bf16.mxu1 %v1367_v61 }
 0x3a4   :  { %1807 = vmatmul.mubr.bf16.vlgmr.msra.gmra.mxu0 %v1366_v62  ;;  %1850 = vmatmul.mubr.bf16.vlgmr.msra.gmra.mxu1 %v1366_v62 }
 0x464   :  { %v1808_v4 = vpop.f32.mrf.mxu0  ;;  %v1851_v5 = vpop.f32.mrf.mxu1 }
 0x465   :  { %v1809_v6 = vadd.f32 %v1808_v4, %v1437_v0  ;;  %v1852_v7 = vadd.f32 %v1851_v5, %v1445_v1 }
 0x466   :  { %v1810_v8 = vpop.f32.mrf.mxu0  ;;  %v1853_v9 = vpop.f32.mrf.mxu1 }
 0x467   :  { %1860 = vst [vmem:[#allocation16] sm:$0xff] %v1809_v6  ;;  %1862 = vst [vmem:[#allocation16 + $0x10] sm:$0xff] %v1852_v7  ;;  %v1811_v10 = vadd.f32 %v1810_v8, %v1441_v2  ;;  %v1854_v11 = vadd.f32 %v1853_v9, %v1449_v3 }
 0x468   :  { %v1812_v38 = vpop.f32.mrf.mxu0  ;;  %v1855_v12 = vpop.f32.mrf.mxu1 }
 0x469   :  { %1861 = vst [vmem:[#allocation16 + $0x8] sm:$0xff] %v1811_v10  ;;  %1863 = vst [vmem:[#allocation16 + $0x18] sm:$0xff] %v1854_v11  ;;  %v1813_v37 = vadd.f32 %v1812_v38, %v1437_v0  ;;  %v1856_v60 = vadd.f32 %v1855_v12, %v1445_v1 }
 0x46a   :  { %v1814_v36 = vpop.f32.mrf.mxu0  ;;  %v1857_v59 = vpop.f32.mrf.mxu1 }
 0x46b   :  { %1864 = vst [vmem:[#allocation16 + $0x20] sm:$0xff] %v1813_v37  ;;  %1866 = vst [vmem:[#allocation16 + $0x30] sm:$0xff] %v1856_v60  ;;  %v1815_v13 = vadd.f32 %v1814_v36, %v1441_v2  ;;  %v1858_v14 = vadd.f32 %v1857_v59, %v1449_v3 }
 0x46d   :  { %1865 = vst [vmem:[#allocation16 + $0x28] sm:$0xff] %v1815_v13  ;;  %1867 = vst [vmem:[#allocation16 + $0x38] sm:$0xff] %v1858_v14 }
 0x46e   :  { %2617 = shalt.err (!%p2614_p2)
}
 0x46f   :  { %s2656_s22 = smov 512   ;;  %s2657_s23 = smov 32  }
 0x470   :  { %1879 = dma.vmem_to_hbm [thread:$0]  %s1874_s14, 1024, %s2806_s11, [#allocation4], %s2656_s22, %s2656_s22, %s2657_s23  }
 0x471   :  { %2636 = dma.done.wait [#allocation4], 1024  }
 0x472   :  { %2637 = vsyncadd [#allocation4], 4294966272 }
 0x473   :  { %1883 = vsyncpa [#allocation3], 1 }
 0x474   :  { %1884 = vsyncpa [#allocation6], 1 }
 0x475   :  { %1885 = vsyncpa [#allocation9], 1 }
 0x476   :  { %1886 = vsyncpa [#allocation12], 1 }
 0x477   :  { %1887 = vsyncpa [#allocation15], 1 }
 0x478   :  { %1888 = vsyncpa [#allocation4], 1 }

</bundles_post_ra>
